<compile_context>
chip_gen: v6e
topology: v6e:2x2x1
jax: 0.10.0
libtpu: 0.0.40
codegen_flags: <defaults>
</compile_context>

<pallas_src>
import functools

import jax
import jax.numpy as jnp
from jax.experimental import pallas as pl
from jax.experimental.pallas import tpu as pltpu

LANE = 128


def _round_up(x: int, m: int) -> int:
    return pl.cdiv(x, m) * m


def _pad2(a, rows, cols, dtype):
    a = a.astype(dtype)
    return jnp.pad(a, ((0, rows - a.shape[0]), (0, cols - a.shape[1])))


def mlp_kernel(x_ref, w1_ref, b1_ref, w2_ref, b2_ref, w3_ref, b3_ref, o_ref):
    # One batch tile per grid step; all three matmuls + biases + tanh fused.
    # MXU operands are bf16, accumulation / bias add / tanh are f32.
    x = x_ref[...]                                                         # bf16
    h1 = jnp.dot(x, w1_ref[...], preferred_element_type=jnp.float32) + b1_ref[...]
    h1 = jnp.tanh(h1)                                                      # f32
    h2 = jnp.dot(h1.astype(w2_ref.dtype), w2_ref[...],
                 preferred_element_type=jnp.float32) + b2_ref[...]
    h2 = jnp.tanh(h2)                                                      # f32
    out = jnp.dot(h2.astype(w3_ref.dtype), w3_ref[...],
                  preferred_element_type=jnp.float32) + b3_ref[...]
    o_ref[...] = out.astype(o_ref.dtype)


@functools.partial(jax.jit, static_argnames=("block_b",))
def mlp_forward(x, params, *, block_b=128):
    """x: (B, input_size) f32. params: dict of w1,b1,w2,b2,w3,b3 (f32, (in,out) layout)."""
    B, in_dim = x.shape
    h2_dim = params["w1"].shape[1]   # hidden_size * 2
    h_dim = params["w2"].shape[1]    # hidden_size
    out_dim = params["w3"].shape[1]  # output_size

    compute_dtype = jnp.bfloat16

    # Lane-pad every feature dim to 128; pad batch to a multiple of block_b.
    in_p = _round_up(in_dim, LANE)
    h2_p = _round_up(h2_dim, LANE)
    h_p = _round_up(h_dim, LANE)
    out_p = _round_up(out_dim, LANE)
    b_p = _round_up(B, block_b)

    xp = _pad2(x, b_p, in_p, compute_dtype)
    w1 = _pad2(params["w1"], in_p, h2_p, compute_dtype)
    w2 = _pad2(params["w2"], h2_p, h_p, compute_dtype)
    w3 = _pad2(params["w3"], h_p, out_p, compute_dtype)
    b1 = _pad2(params["b1"].reshape(1, -1), 1, h2_p, jnp.float32)
    b2 = _pad2(params["b2"].reshape(1, -1), 1, h_p, jnp.float32)
    b3 = _pad2(params["b3"].reshape(1, -1), 1, out_p, jnp.float32)

    grid = (b_p // block_b,)

    # x / out are tiled along the batch axis; weights & biases are loaded whole
    # (grid-invariant index_map -> fetched once, kept resident in VMEM).
    # For much larger hidden sizes, budget VMEM via
    # pltpu.CompilerParams(vmem_limit_bytes=...) and/or pl.Buffered(1) on the
    # grid-invariant weight specs; at these (padded) sizes the footprint is
    # well under the scoped default on all of v5e/v6e/v7x.
    in_specs = [
        pl.BlockSpec((block_b, in_p), lambda i: (i, 0)),
        pl.BlockSpec((in_p, h2_p), lambda i: (0, 0)),
        pl.BlockSpec((1, h2_p), lambda i: (0, 0)),
        pl.BlockSpec((h2_p, h_p), lambda i: (0, 0)),
        pl.BlockSpec((1, h_p), lambda i: (0, 0)),
        pl.BlockSpec((h_p, out_p), lambda i: (0, 0)),
        pl.BlockSpec((1, out_p), lambda i: (0, 0)),
    ]
    out_spec = pl.BlockSpec((block_b, out_p), lambda i: (i, 0))

    flops = 2 * b_p * (in_p * h2_p + h2_p * h_p + h_p * out_p)
    transcendentals = b_p * (h2_p + h_p)
    bytes_accessed = (
        xp.size * xp.dtype.itemsize
        + w1.size * w1.dtype.itemsize
        + w2.size * w2.dtype.itemsize
        + w3.size * w3.dtype.itemsize
        + (b1.size + b2.size + b3.size) * 4
        + b_p * out_p * 4
    )

    out = pl.pallas_call(
        mlp_kernel,
        out_shape=jax.ShapeDtypeStruct((b_p, out_p), jnp.float32),
        grid_spec=pltpu.PrefetchScalarGridSpec(
            num_scalar_prefetch=0,
            grid=grid,
            in_specs=in_specs,
            out_specs=out_spec,
        ),
        compiler_params=pltpu.CompilerParams(
            dimension_semantics=("parallel",),
        ),
        cost_estimate=pl.CostEstimate(
            flops=flops,
            transcendentals=transcendentals,
            bytes_accessed=bytes_accessed,
        ),
    )(xp, w1, b1, w2, b2, w3, b3)

    # Slice off batch and output-feature padding.
    return out[:B, :out_dim]


def init_params(key, input_size, output_size, hidden_size, dtype=jnp.float32):
    """Deterministic init mimicking nn.Linear (uniform in +/- 1/sqrt(fan_in)).
    Weights stored as (in_features, out_features), i.e. transpose of PyTorch."""
    def linear(key, fan_in, fan_out):
        kw, kb = jax.random.split(key)
        bound = 1.0 / jnp.sqrt(fan_in)
        w = jax.random.uniform(kw, (fan_in, fan_out), dtype, -bound, bound)
        b = jax.random.uniform(kb, (1, fan_out), dtype, -bound, bound)
        return w, b

    k1, k2, k3 = jax.random.split(key, 3)
    w1, b1 = linear(k1, input_size, hidden_size * 2)
    w2, b2 = linear(k2, hidden_size * 2, hidden_size)
    w3, b3 = linear(k3, hidden_size, output_size)
    return {"w1": w1, "b1": b1, "w2": w2, "b2": b2, "w3": w3, "b3": b3}


def mlp_reference(x, p):
    h1 = jnp.tanh(x @ p["w1"] + p["b1"])
    h2 = jnp.tanh(h1 @ p["w2"] + p["b2"])
    return h2 @ p["w3"] + p["b3"]


if __name__ == "__main__":
    key = jax.random.PRNGKey(0)
    kx, kp = jax.random.split(key)

    # Small shapes; batch is deliberately NOT a multiple of the tile to
    # exercise the ragged-batch padding path (200 -> 256 -> grid of 2 tiles).
    batch, input_size, hidden_size, output_size = 200, 32, 32, 16

    x = jax.random.normal(kx, (batch, input_size), dtype=jnp.float32)
    params = init_params(kp, input_size, output_size, hidden_size)

    out = mlp_forward(x, params, block_b=128)
    out = jax.block_until_ready(out)

    ref = mlp_reference(x, params)
    assert out.shape == (batch, output_size)
    # bf16 MXU feed with f32 accumulation -> compare against f32 reference
    # with a bf16-appropriate tolerance.
    err = float(jnp.max(jnp.abs(out - ref)))
    assert jnp.allclose(out, ref, atol=3e-2, rtol=3e-2), f"max abs err {err}"

    print("KERNEL_OK")
</pallas_src>

<mosaic_0001>
module attributes {stable_mosaic.version = 11 : i64} {
  func.func @mlp_kernel(%arg0: i32, %arg1: memref<128x128xbf16, #tpu.memory_space<vmem>>, %arg2: memref<128x128xbf16, #tpu.memory_space<vmem>>, %arg3: memref<1x128xf32, #tpu.memory_space<vmem>>, %arg4: memref<128x128xbf16, #tpu.memory_space<vmem>>, %arg5: memref<1x128xf32, #tpu.memory_space<vmem>>, %arg6: memref<128x128xbf16, #tpu.memory_space<vmem>>, %arg7: memref<1x128xf32, #tpu.memory_space<vmem>>, %arg8: memref<128x128xf32, #tpu.memory_space<vmem>>) attributes {dimension_semantics = [#tpu.dimension_semantics<parallel>], iteration_bounds = array<i64: 2>, scalar_prefetch = 0 : i64, scratch_operands = 0 : i64, tpu.core_type = #tpu.core_type<tc>, window_params = [{transform_indices = @transform_0, window_bounds = array<i64: 128, 128>}, {pipeline_mode = #tpu.pipeline_mode<synchronous>, transform_indices = @transform_1, window_bounds = array<i64: 128, 128>}, {pipeline_mode = #tpu.pipeline_mode<synchronous>, transform_indices = @transform_2, window_bounds = array<i64: 1, 128>}, {pipeline_mode = #tpu.pipeline_mode<synchronous>, transform_indices = @transform_3, window_bounds = array<i64: 128, 128>}, {pipeline_mode = #tpu.pipeline_mode<synchronous>, transform_indices = @transform_4, window_bounds = array<i64: 1, 128>}, {pipeline_mode = #tpu.pipeline_mode<synchronous>, transform_indices = @transform_5, window_bounds = array<i64: 128, 128>}, {pipeline_mode = #tpu.pipeline_mode<synchronous>, transform_indices = @transform_6, window_bounds = array<i64: 1, 128>}, {transform_indices = @transform_7, window_bounds = array<i64: 128, 128>}]} {
    %c0 = arith.constant 0 : index
    %c0_0 = arith.constant 0 : index
    %0 = vector.load %arg1[%c0, %c0_0] : memref<128x128xbf16, #tpu.memory_space<vmem>>, vector<128x128xbf16>
    %c0_1 = arith.constant 0 : index
    %c0_2 = arith.constant 0 : index
    %1 = vector.load %arg2[%c0_1, %c0_2] : memref<128x128xbf16, #tpu.memory_space<vmem>>, vector<128x128xbf16>
    %cst = arith.constant dense<0.000000e+00> : vector<128x128xf32>
    %2 = tpu.matmul %0, %1, %cst {dimension_numbers = #tpu.dot_dimension_numbers<[1], [0], [0], [1], [0, 0, 1, 1], [], []>} : vector<128x128xbf16>, vector<128x128xbf16>, vector<128x128xf32> -> vector<128x128xf32>
    %c0_3 = arith.constant 0 : index
    %c0_4 = arith.constant 0 : index
    %3 = vector.load %arg3[%c0_3, %c0_4] : memref<1x128xf32, #tpu.memory_space<vmem>>, vector<1x128xf32>
    %4 = vector.broadcast %3 : vector<1x128xf32> to vector<128x128xf32>
    %5 = arith.addf %2, %4 : vector<128x128xf32>
    %6 = math.tanh %5 : vector<128x128xf32>
    %7 = arith.truncf %6 : vector<128x128xf32> to vector<128x128xbf16>
    %c0_5 = arith.constant 0 : index
    %c0_6 = arith.constant 0 : index
    %8 = vector.load %arg4[%c0_5, %c0_6] : memref<128x128xbf16, #tpu.memory_space<vmem>>, vector<128x128xbf16>
    %cst_7 = arith.constant dense<0.000000e+00> : vector<128x128xf32>
    %9 = tpu.matmul %7, %8, %cst_7 {dimension_numbers = #tpu.dot_dimension_numbers<[1], [0], [0], [1], [0, 0, 1, 1], [], []>} : vector<128x128xbf16>, vector<128x128xbf16>, vector<128x128xf32> -> vector<128x128xf32>
    %c0_8 = arith.constant 0 : index
    %c0_9 = arith.constant 0 : index
    %10 = vector.load %arg5[%c0_8, %c0_9] : memref<1x128xf32, #tpu.memory_space<vmem>>, vector<1x128xf32>
    %11 = vector.broadcast %10 : vector<1x128xf32> to vector<128x128xf32>
    %12 = arith.addf %9, %11 : vector<128x128xf32>
    %13 = math.tanh %12 : vector<128x128xf32>
    %14 = arith.truncf %13 : vector<128x128xf32> to vector<128x128xbf16>
    %c0_10 = arith.constant 0 : index
    %c0_11 = arith.constant 0 : index
    %15 = vector.load %arg6[%c0_10, %c0_11] : memref<128x128xbf16, #tpu.memory_space<vmem>>, vector<128x128xbf16>
    %cst_12 = arith.constant dense<0.000000e+00> : vector<128x128xf32>
    %16 = tpu.matmul %14, %15, %cst_12 {dimension_numbers = #tpu.dot_dimension_numbers<[1], [0], [0], [1], [0, 0, 1, 1], [], []>} : vector<128x128xbf16>, vector<128x128xbf16>, vector<128x128xf32> -> vector<128x128xf32>
    %c0_13 = arith.constant 0 : index
    %c0_14 = arith.constant 0 : index
    %17 = vector.load %arg7[%c0_13, %c0_14] : memref<1x128xf32, #tpu.memory_space<vmem>>, vector<1x128xf32>
    %18 = vector.broadcast %17 : vector<1x128xf32> to vector<128x128xf32>
    %19 = arith.addf %16, %18 : vector<128x128xf32>
    %c0_15 = arith.constant 0 : index
    %c0_16 = arith.constant 0 : index
    %20 = vector.load %arg8[%c0_15, %c0_16] : memref<128x128xf32, #tpu.memory_space<vmem>>, vector<128x128xf32>
    tpu.vector_store %arg8[%c0_15, %c0_16], %19 {strides = array<i32>} : memref<128x128xf32, #tpu.memory_space<vmem>>, vector<128x128xf32>,
    return
  }
  func.func @transform_0(%arg0: i32) -> (i32, i32) {
    %c0_i32 = arith.constant 0 : i32
    %c0_i32_0 = arith.constant 0 : i32
    return %arg0, %c0_i32 : i32, i32
  }
  func.func @transform_1(%arg0: i32) -> (i32, i32) {
    %c0_i32 = arith.constant 0 : i32
    %c0_i32_0 = arith.constant 0 : i32
    %c0_i32_1 = arith.constant 0 : i32
    return %c0_i32, %c0_i32_0 : i32, i32
  }
  func.func @transform_2(%arg0: i32) -> (i32, i32) {
    %c0_i32 = arith.constant 0 : i32
    %c0_i32_0 = arith.constant 0 : i32
    %c0_i32_1 = arith.constant 0 : i32
    return %c0_i32, %c0_i32_0 : i32, i32
  }
  func.func @transform_3(%arg0: i32) -> (i32, i32) {
    %c0_i32 = arith.constant 0 : i32
    %c0_i32_0 = arith.constant 0 : i32
    %c0_i32_1 = arith.constant 0 : i32
    return %c0_i32, %c0_i32_0 : i32, i32
  }
  func.func @transform_4(%arg0: i32) -> (i32, i32) {
    %c0_i32 = arith.constant 0 : i32
    %c0_i32_0 = arith.constant 0 : i32
    %c0_i32_1 = arith.constant 0 : i32
    return %c0_i32, %c0_i32_0 : i32, i32
  }
  func.func @transform_5(%arg0: i32) -> (i32, i32) {
    %c0_i32 = arith.constant 0 : i32
    %c0_i32_0 = arith.constant 0 : i32
    %c0_i32_1 = arith.constant 0 : i32
    return %c0_i32, %c0_i32_0 : i32, i32
  }
  func.func @transform_6(%arg0: i32) -> (i32, i32) {
    %c0_i32 = arith.constant 0 : i32
    %c0_i32_0 = arith.constant 0 : i32
    %c0_i32_1 = arith.constant 0 : i32
    return %c0_i32, %c0_i32_0 : i32, i32
  }
  func.func @transform_7(%arg0: i32) -> (i32, i32) {
    %c0_i32 = arith.constant 0 : i32
    %c0_i32_0 = arith.constant 0 : i32
    return %arg0, %c0_i32 : i32, i32
  }
}

</mosaic_0001>

<bundles_post_ra>
// kernel: mlp_forward.1
= control target key start
LH: loop header
LB: loop body
LE: loop exit
PB: predicated region body
PF: predicated region fallthrough
CT: control target
= control target key end

     0   :  { %s1329_s24 = smov 0   ;;  %s1465_s0 = inlined_call_operand.vmem [shape: bf16[256,128], index: 0, kind: input, shape index: {}]   ;;  %s1466_s1 = inlined_call_operand.vmem [shape: bf16[128,128], index: 1, kind: input, shape index: {}]   ;;  %s1467_s2 = inlined_call_operand.vmem [shape: f32[1,128], index: 2, kind: input, shape index: {}]   ;;  %s1468_s3 = inlined_call_operand.vmem [shape: bf16[128,128], index: 3, kind: input, shape index: {}]   ;;  %s1469_s4 = inlined_call_operand.vmem [shape: f32[1,128], index: 4, kind: input, shape index: {}]   ;;  %s1470_s5 = inlined_call_operand.vmem [shape: bf16[128,128], index: 5, kind: input, shape index: {}]   ;;  %s1471_s6 = inlined_call_operand.vmem [shape: f32[1,128], index: 6, kind: input, shape index: {}]   ;;  %s1472_s7 = inlined_call_operand.vmem [shape: f32[256,128], index: 7, kind: output, shape index: {}]  }
   0x1 LB: > { %s971_s25 = sadd.s32 4294967295, %s1287_s24   ;;  %p975_p0 = scmp.ge.s32.totalorder %s1287_s24, 1  ;;  %s1287_s24 = sphi %s1329_s24, %s17_s24  }
   0x2   : > { %p238_p1 = scmp.lt.s32.totalorder %s1287_s24, 3 }
   0x4   : > { %p239_p2 = pnand %p975_p0, %p238_p1 }
   0x5   : > { %s976_s28 = sshll.u32 (!%p239_p2), %s971_s25, 4 }
   0x6   : > { %242 = sbr.rel (%p239_p2) target bundleno = 706 (0x2c2), region = 48  ;;  %p271_p3 = scmp.lt.s32.totalorder (!%p239_p2), %s976_s28, 31 }
   0xb   : > { %v1185_v0 = vld [vmem:[%s1466_s1 + $0x38] sm:$0xff]   ;;  %v1186_v1 = vld [vmem:[%s1466_s1 + $0x30] sm:$0xff]   ;;  %s1474_s28 = smov (!%p271_p3, %s976_s28), 31  ;;  %v1187_v2 = vld [vmem:[%s1466_s1 + $0x28] sm:$0xff]  }
   0xc   : > { %1065 = vmatprep.subr.bf16.mxu0 %v1185_v0  ;;  %s977_s10 = sshll.u32 %s1474_s28, 2  ;;  %v1188_v3 = vld [vmem:[%s1466_s1 + $0x20] sm:$0xff]   ;;  %v1189_v5 = vld [vmem:[%s1466_s1 + $0x18] sm:$0xff]   ;;  %v1190_v6 = vld [vmem:[%s1466_s1 + $0x10] sm:$0xff]   ;;  %s979_s18 = sshll.u32 %s1474_s28, 3 }
   0xd   : > { %1066 = vmatpush3.bf16.msra.mxu0 %v1185_v0  ;;  %s1352_s13 = scalar_lea.vmem %s1465_s0, %s977_s10  ;;  %v1201_v7 = vld [vmem:[%s1468_s3 + $0x38] sm:$0xff]   ;;  %v1202_v8 = vld [vmem:[%s1468_s3 + $0x30] sm:$0xff]   ;;  %v1191_v9 = vld [vmem:[%s1466_s1 + $0x8] sm:$0xff]   ;;  %s1444_s23 = scalar_lea.vmem %s1472_s7, %s979_s18 }
   0xe   : > { %1067 = vmatprep.subr.bf16.mxu0 %v1186_v1  ;;  %v1193_v4 = vld [vmem:[%s1352_s13] sm:$0xff]   ;;  %1097 = vmatprep.subr.bf16.mxu1 %v1201_v7  ;;  %v1194_v11 = vld [vmem:[%s1352_s13 + $0x8] sm:$0xff]   ;;  %v1195_v12 = vld [vmem:[%s1352_s13 + $0x10] sm:$0xff]  }
   0xf   : > { %1081 = vmatprep.mubr.bf16.mxu0 %v1193_v4  ;;  %1098 = vmatpush3.bf16.msra.mxu1 %v1201_v7  ;;  %v1192_v10 = vld [vmem:[%s1466_s1] sm:$0xff]   ;;  %v1196_v13 = vld [vmem:[%s1352_s13 + $0x18] sm:$0xff]   ;;  %v1198_v15 = vld [vmem:[%s1352_s13 + $0x28] sm:$0xff]  }
  0x10   : > { %1099 = vmatprep.subr.bf16.mxu1 %v1202_v8  ;;  %v1197_v14 = vld [vmem:[%s1352_s13 + $0x20] sm:$0xff]   ;;  %v1199_v16 = vld [vmem:[%s1352_s13 + $0x30] sm:$0xff]   ;;  %v1200_v17 = vld [vmem:[%s1352_s13 + $0x38] sm:$0xff]  }
  0x11   : > { %1068 = vmatpush3.bf16.msra.mxu0 %v1186_v1  ;;  %v1203_v18 = vld [vmem:[%s1468_s3 + $0x28] sm:$0xff]   ;;  %v1204_v19 = vld [vmem:[%s1468_s3 + $0x20] sm:$0xff]   ;;  %v1205_v20 = vld [vmem:[%s1468_s3 + $0x18] sm:$0xff]  }
  0x12   : > { %1069 = vmatprep.subr.bf16.mxu0 %v1187_v2  ;;  %v1206_v21 = vld [vmem:[%s1468_s3 + $0x10] sm:$0xff]   ;;  %v1207_v22 = vld [vmem:[%s1468_s3 + $0x8] sm:$0xff]   ;;  %v1208_v23 = vld [vmem:[%s1468_s3] sm:$0xff]  }
  0x13   : > { %1100 = vmatpush3.bf16.msra.mxu1 %v1202_v8  ;;  %v1209_v24 = vld [vmem:[%s1470_s5 + $0x38] sm:$0xff]   ;;  %v1407_v25 = vld [vmem:[%s1470_s5 + $0x30] sm:$0xff]   ;;  %v980_v27 = vld [vmem:[%s1467_s2] ss:$0 sm:$0xff] }
  0x14   : > { %1101 = vmatprep.subr.bf16.mxu1 %v1203_v18 }
  0x15   : > { %1070 = vmatpush3.bf16.msra.mxu0 %v1187_v2 }
  0x16   : > { %1071 = vmatprep.subr.bf16.mxu0 %v1188_v3 }
  0x17   : > { %1102 = vmatpush3.bf16.msra.mxu1 %v1203_v18 }
  0x18   : > { %1103 = vmatprep.subr.bf16.mxu1 %v1204_v19 }
  0x19   : > { %1072 = vmatpush3.bf16.msra.mxu0 %v1188_v3 }
  0x1a   : > { %1073 = vmatprep.subr.bf16.mxu0 %v1189_v5 }
  0x1b   : > { %1104 = vmatpush3.bf16.msra.mxu1 %v1204_v19  ;;  %v1211_v19 = vld [vmem:[%s1470_s5 + $0x28] sm:$0xff]  }
  0x1c   : > { %1105 = vmatprep.subr.bf16.mxu1 %v1205_v20 }
  0x1d   : > { %1074 = vmatpush3.bf16.msra.mxu0 %v1189_v5 }
  0x1e   : > { %1075 = vmatprep.subr.bf16.mxu0 %v1190_v6 }
  0x1f   : > { %1106 = vmatpush3.bf16.msra.mxu1 %v1205_v20  ;;  %v1212_v20 = vld [vmem:[%s1470_s5 + $0x20] sm:$0xff]  }
  0x20   : > { %1107 = vmatprep.subr.bf16.mxu1 %v1206_v21 }
  0x21   : > { %1076 = vmatpush3.bf16.msra.mxu0 %v1190_v6 }
  0x22   : > { %1077 = vmatprep.subr.bf16.mxu0 %v1191_v9 }
  0x23   : > { %1108 = vmatpush3.bf16.msra.mxu1 %v1206_v21  ;;  %v1213_v21 = vld [vmem:[%s1470_s5 + $0x18] sm:$0xff]  }
  0x24   : > { %1109 = vmatprep.subr.bf16.mxu1 %v1207_v22 }
  0x25   : > { %1078 = vmatpush3.bf16.msra.mxu0 %v1191_v9 }
  0x26   : > { %1079 = vmatprep.subr.bf16.mxu0 %v1192_v10 }
  0x27   : > { %1110 = vmatpush3.bf16.msra.mxu1 %v1207_v22  ;;  %v1214_v22 = vld [vmem:[%s1470_s5 + $0x10] sm:$0xff]  }
  0x28   : > { %1111 = vmatprep.subr.bf16.mxu1 %v1208_v23 }
  0x29   : > { %1080 = vmatpush3.bf16.msra.mxu0 %v1192_v10 }
  0x2a   : > { %1129 = vmatprep.subr.bf16.mxu0 %v1209_v24 }
  0x2b   : > { %1112 = vmatpush3.bf16.msra.mxu1 %v1208_v23  ;;  %v1215_v23 = vld [vmem:[%s1470_s5 + $0x8] sm:$0xff]  }
  0x2c   : > { %1082 = vmatmul.mubr.bf16.vlgmr.msra.gmra.mxu0 %v1194_v11  ;;  %1161 = vmatprep.subr.bf16.mxu1 %v1209_v24 }
  0x2d   : > { %1085 = vmatprep.mubr.bf16.mxu0 %v1195_v12  ;;  %1130 = vmatpush3.bf16.msra.mxu0 %v1209_v24 }
  0x2e   : > { %1131 = vmatprep.subr.bf16.mxu0 %v1407_v25 }
  0x31   : > { %1132 = vmatpush3.bf16.msra.mxu0 %v1407_v25 }
  0x32   : > { %1133 = vmatprep.subr.bf16.mxu0 %v1211_v19 }
  0x34   : > { %1086 = vmatmul.mubr.bf16.gmra.mxu0 %v1196_v13 }
  0x35   : > { %1089 = vmatprep.mubr.bf16.mxu0 %v1197_v14  ;;  %1134 = vmatpush3.bf16.msra.mxu0 %v1211_v19 }
  0x36   : > { %1135 = vmatprep.subr.bf16.mxu0 %v1212_v20 }
  0x39   : > { %1136 = vmatpush3.bf16.msra.mxu0 %v1212_v20 }
  0x3a   : > { %1137 = vmatprep.subr.bf16.mxu0 %v1213_v21 }
  0x3c   : > { %1090 = vmatmul.mubr.bf16.gmra.mxu0 %v1198_v15 }
  0x3d   : > { %1093 = vmatprep.mubr.bf16.mxu0 %v1199_v16  ;;  %1138 = vmatpush3.bf16.msra.mxu0 %v1213_v21 }
  0x3e   : > { %1139 = vmatprep.subr.bf16.mxu0 %v1214_v22 }
  0x41   : > { %1140 = vmatpush3.bf16.msra.mxu0 %v1214_v22 }
  0x42   : > { %1141 = vmatprep.subr.bf16.mxu0 %v1215_v23 }
  0x44   : > { %1094 = vmatmul.mubr.bf16.gmra.mxu0 %v1200_v17 }
  0x45   : > { %1142 = vmatpush3.bf16.msra.mxu0 %v1215_v23 }
  0xec   : > { %v1083_v26 = vpop.f32.mrf.mxu0 }
  0xed   : > { %v461_v32 = vadd.f32 %v1083_v26, %v980_v27  ;;  %v997_v26 = vld [vmem:[%s1469_s4] ss:$0 sm:$0xff] }
  0xee   : > { %v452_v28 = vpop.f32.mrf.mxu0 }
  0xef   : > { %v453_v29 = vadd.f32 %v980_v27, %v452_v28 }
  0xf0   : > { %v1084_v30 = vpop.f32.mrf.mxu0 }
  0xf1   : > { %v464_v31 = vadd.f32 %v1084_v30, %v980_v27  ;;  %1217 = vtanh.f32 %v453_v29 }
  0xf2   : > { %v455_v33 = vpop.f32.mrf.mxu0 }
  0xf3   : > { %v456_v34 = vadd.f32 %v980_v27, %v455_v33  ;;  %1219 = vtanh.f32 %v464_v31 }
  0xf4   : > { %v1087_v35 = vpop.f32.mrf.mxu0 }
  0xf5   : > { %1221 = vtanh.f32 %v456_v34  ;;  %v477_v40 = vadd.f32 %v1087_v35, %v980_v27 }
  0xf6   : > { %1223 = vtanh.f32 %v461_v32  ;;  %v468_v36 = vpop.f32.mrf.mxu0 }
  0xf7   : > { %v469_v37 = vadd.f32 %v980_v27, %v468_v36 }
  0xf8   : > { %v1088_v38 = vpop.f32.mrf.mxu0 }
  0xf9   : > { %v480_v39 = vadd.f32 %v1088_v38, %v980_v27  ;;  %1225 = vtanh.f32 %v469_v37 }
  0xfa   : > { %v471_v41 = vpop.f32.mrf.mxu0 }
  0xfb   : > { %v472_v42 = vadd.f32 %v980_v27, %v471_v41  ;;  %1227 = vtanh.f32 %v480_v39 }
  0xfc   : > { %v1091_v43 = vpop.f32.mrf.mxu0 }
  0xfd   : > { %1229 = vtanh.f32 %v472_v42  ;;  %v493_v51 = vadd.f32 %v1091_v43, %v980_v27 }
  0xfe   : > { %1231 = vtanh.f32 %v477_v40  ;;  %v484_v44 = vpop.f32.mrf.mxu0  ;;  %v1218_v46 = vpop.eup %1217 }
  0xff   : > { %v485_v45 = vadd.f32 %v980_v27, %v484_v44 }
 0x100   : > { %v1092_v47 = vpop.f32.mrf.mxu0  ;;  %v1220_v48 = vpop.eup %1219 }
 0x101   : > { %v496_v49 = vadd.f32 %v1092_v47, %v980_v27  ;;  %1233 = vtanh.f32 %v485_v45 }
 0x102   : > { %v1222_v50 = vpop.eup %1221  ;;  %v487_v52 = vpop.f32.mrf.mxu0 }
 0x103   : > { %v1224_v53 = vpop.eup %1223  ;;  %v488_v54 = vadd.f32 %v980_v27, %v487_v52  ;;  %v531_v55 = vpack.c.bf16 %v1222_v50, %v1218_v46  ;;  %1235 = vtanh.f32 %v496_v49 }
 0x104   : > { %v1095_v56 = vpop.f32.mrf.mxu0  ;;  %v532_v57 = vpack.c.bf16 %v1220_v48, %v1224_v53 }
 0x105   : > { %1237 = vtanh.f32 %v488_v54  ;;  %1113 = vmatprep.mubr.bf16.mxu1 %v531_v55  ;;  %v509_v1 = vadd.f32 %v1095_v56, %v980_v27 }
 0x106   : > { %1239 = vtanh.f32 %v493_v51  ;;  %v500_v58 = vpop.f32.mrf.mxu0  ;;  %1114 = vmatmul.mubr.bf16.vlgmr.msra.gmra.mxu1 %v532_v57  ;;  %v1226_v60 = vpop.eup %1225 }
 0x107   : > { %v501_v59 = vadd.f32 %v980_v27, %v500_v58  ;;  %1169 = vmatpush3.bf16.msra.mxu1 %v1209_v24  ;;  %v1216_v24 = vld [vmem:[%s1470_s5] sm:$0xff]  }
 0x108   : > { %v1096_v61 = vpop.f32.mrf.mxu0  ;;  %1162 = vmatprep.subr.bf16.mxu1 %v1407_v25  ;;  %v1228_v62 = vpop.eup %1227  ;;  %1143 = vmatprep.subr.bf16.mxu0 %v1216_v24 }
 0x109   : > { %v512_v63 = vadd.f32 %v1096_v61, %v980_v27  ;;  %1241 = vtanh.f32 %v501_v59  ;;  %1144 = vmatpush3.bf16.msra.mxu0 %v1216_v24 }
 0x10a   : > { %v1230_v0 = vpop.eup %1229  ;;  %v503_v2 = vpop.f32.mrf.mxu0 }
 0x10b   : > { %v1232_v3 = vpop.eup %1231  ;;  %v504_v4 = vadd.f32 %v980_v27, %v503_v2  ;;  %v533_v5 = vpack.c.bf16 %v1230_v0, %v1226_v60  ;;  %1170 = vmatpush3.bf16.msra.mxu1 %v1407_v25  ;;  %1243 = vtanh.f32 %v512_v63 }
 0x10c   : > { %v534_v6 = vpack.c.bf16 %v1228_v62, %v1232_v3  ;;  %1163 = vmatprep.subr.bf16.mxu1 %v1211_v19 }
 0x10d   : > { %1245 = vtanh.f32 %v504_v4  ;;  %1117 = vmatprep.mubr.bf16.mxu1 %v533_v5 }
 0x10e   : > { %1247 = vtanh.f32 %v509_v1  ;;  %1118 = vmatmul.mubr.bf16.gmra.mxu1 %v534_v6  ;;  %v1234_v7 = vpop.eup %1233 }
 0x10f   : > { %1171 = vmatpush3.bf16.msra.mxu1 %v1211_v19 }
 0x110   : > { %v1236_v8 = vpop.eup %1235  ;;  %1164 = vmatprep.subr.bf16.mxu1 %v1212_v20 }
 0x112   : > { %v1238_v9 = vpop.eup %1237 }
 0x113   : > { %v1240_v10 = vpop.eup %1239  ;;  %v535_v11 = vpack.c.bf16 %v1238_v9, %v1234_v7  ;;  %1172 = vmatpush3.bf16.msra.mxu1 %v1212_v20 }
 0x114   : > { %v536_v12 = vpack.c.bf16 %v1236_v8, %v1240_v10  ;;  %1165 = vmatprep.subr.bf16.mxu1 %v1213_v21 }
 0x115   : > { %1121 = vmatprep.mubr.bf16.mxu1 %v535_v11 }
 0x116   : > { %1122 = vmatmul.mubr.bf16.gmra.mxu1 %v536_v12  ;;  %v1242_v13 = vpop.eup %1241 }
 0x117   : > { %1173 = vmatpush3.bf16.msra.mxu1 %v1213_v21 }
 0x118   : > { %v1244_v14 = vpop.eup %1243  ;;  %1166 = vmatprep.subr.bf16.mxu1 %v1214_v22 }
 0x11a   : > { %v1246_v15 = vpop.eup %1245 }
 0x11b   : > { %v1248_v16 = vpop.eup %1247  ;;  %v537_v17 = vpack.c.bf16 %v1246_v15, %v1242_v13  ;;  %1174 = vmatpush3.bf16.msra.mxu1 %v1214_v22 }
 0x11c   : > { %v538_v18 = vpack.c.bf16 %v1244_v14, %v1248_v16  ;;  %1167 = vmatprep.subr.bf16.mxu1 %v1215_v23 }
 0x11d   : > { %1125 = vmatprep.mubr.bf16.mxu1 %v537_v17 }
 0x11e   : > { %1126 = vmatmul.mubr.bf16.gmra.mxu1 %v538_v18  ;;  %v1006_v18 = vld [vmem:[%s1471_s6] ss:$0 sm:$0xff] }
 0x11f   : > { %1175 = vmatpush3.bf16.msra.mxu1 %v1215_v23 }
 0x120   : > { %1168 = vmatprep.subr.bf16.mxu1 %v1216_v24 }
 0x123   : > { %1176 = vmatpush3.bf16.msra.mxu1 %v1216_v24 }
 0x1c6   : > { %v1115_v25 = vpop.f32.mrf.mxu1 }
 0x1c7   : > { %v653_v31 = vadd.f32 %v1115_v25, %v997_v26 }
 0x1c8   : > { %v644_v27 = vpop.f32.mrf.mxu1 }
 0x1c9   : > { %v645_v28 = vadd.f32 %v997_v26, %v644_v27 }
 0x1ca   : > { %v1116_v29 = vpop.f32.mrf.mxu1 }
 0x1cb   : > { %v656_v30 = vadd.f32 %v1116_v29, %v997_v26  ;;  %1249 = vtanh.f32 %v645_v28 }
 0x1cc   : > { %v647_v32 = vpop.f32.mrf.mxu1 }
 0x1cd   : > { %v648_v33 = vadd.f32 %v997_v26, %v647_v32  ;;  %1251 = vtanh.f32 %v656_v30 }
 0x1ce   : > { %v1119_v34 = vpop.f32.mrf.mxu1 }
 0x1cf   : > { %1253 = vtanh.f32 %v648_v33  ;;  %v669_v39 = vadd.f32 %v1119_v34, %v997_v26 }
 0x1d0   : > { %1255 = vtanh.f32 %v653_v31  ;;  %v660_v35 = vpop.f32.mrf.mxu1 }
 0x1d1   : > { %v661_v36 = vadd.f32 %v997_v26, %v660_v35 }
 0x1d2   : > { %v1120_v37 = vpop.f32.mrf.mxu1 }
 0x1d3   : > { %v672_v38 = vadd.f32 %v1120_v37, %v997_v26  ;;  %1257 = vtanh.f32 %v661_v36 }
 0x1d4   : > { %v663_v40 = vpop.f32.mrf.mxu1 }
 0x1d5   : > { %v664_v41 = vadd.f32 %v997_v26, %v663_v40  ;;  %1259 = vtanh.f32 %v672_v38 }
 0x1d6   : > { %v1123_v42 = vpop.f32.mrf.mxu1 }
 0x1d7   : > { %1261 = vtanh.f32 %v664_v41  ;;  %v685_v50 = vadd.f32 %v1123_v42, %v997_v26 }
 0x1d8   : > { %1263 = vtanh.f32 %v669_v39  ;;  %v676_v43 = vpop.f32.mrf.mxu1  ;;  %v1250_v45 = vpop.eup %1249 }
 0x1d9   : > { %v677_v44 = vadd.f32 %v997_v26, %v676_v43 }
 0x1da   : > { %v1124_v46 = vpop.f32.mrf.mxu1  ;;  %v1252_v47 = vpop.eup %1251 }
 0x1db   : > { %v688_v48 = vadd.f32 %v1124_v46, %v997_v26  ;;  %1265 = vtanh.f32 %v677_v44 }
 0x1dc   : > { %v1254_v49 = vpop.eup %1253  ;;  %v679_v51 = vpop.f32.mrf.mxu1 }
 0x1dd   : > { %v1256_v52 = vpop.eup %1255  ;;  %v680_v53 = vadd.f32 %v997_v26, %v679_v51  ;;  %v723_v54 = vpack.c.bf16 %v1254_v49, %v1250_v45  ;;  %1267 = vtanh.f32 %v688_v48 }
 0x1de   : > { %v1127_v55 = vpop.f32.mrf.mxu1  ;;  %v724_v56 = vpack.c.bf16 %v1252_v47, %v1256_v52 }
 0x1df   : > { %1269 = vtanh.f32 %v680_v53  ;;  %1145 = vmatprep.mubr.bf16.mxu0 %v723_v54  ;;  %v701_v0 = vadd.f32 %v1127_v55, %v997_v26 }
 0x1e0   : > { %1271 = vtanh.f32 %v685_v50  ;;  %v692_v57 = vpop.f32.mrf.mxu1  ;;  %1146 = vmatmul.mubr.bf16.vlgmr.msra.gmra.mxu0 %v724_v56  ;;  %v1258_v59 = vpop.eup %1257 }
 0x1e1   : > { %v693_v58 = vadd.f32 %v997_v26, %v692_v57 }
 0x1e2   : > { %v1128_v60 = vpop.f32.mrf.mxu1  ;;  %v1260_v61 = vpop.eup %1259 }
 0x1e3   : > { %v704_v62 = vadd.f32 %v1128_v60, %v997_v26  ;;  %1273 = vtanh.f32 %v693_v58 }
 0x1e4   : > { %v1262_v63 = vpop.eup %1261  ;;  %v695_v1 = vpop.f32.mrf.mxu1 }
 0x1e5   : > { %v1264_v2 = vpop.eup %1263  ;;  %v696_v3 = vadd.f32 %v997_v26, %v695_v1  ;;  %v725_v4 = vpack.c.bf16 %v1262_v63, %v1258_v59  ;;  %1275 = vtanh.f32 %v704_v62 }
 0x1e6   : > { %v726_v5 = vpack.c.bf16 %v1260_v61, %v1264_v2 }
 0x1e7   : > { %1277 = vtanh.f32 %v696_v3  ;;  %1149 = vmatprep.mubr.bf16.mxu0 %v725_v4 }
 0x1e8   : > { %1279 = vtanh.f32 %v701_v0  ;;  %1150 = vmatmul.mubr.bf16.gmra.mxu0 %v726_v5  ;;  %v1266_v6 = vpop.eup %1265 }
 0x1ea   : > { %v1268_v7 = vpop.eup %1267 }
 0x1ec   : > { %v1270_v8 = vpop.eup %1269 }
 0x1ed   : > { %v1272_v9 = vpop.eup %1271  ;;  %v727_v10 = vpack.c.bf16 %v1270_v8, %v1266_v6 }
 0x1ee   : > { %v728_v11 = vpack.c.bf16 %v1268_v7, %v1272_v9 }
 0x1ef   : > { %1153 = vmatprep.mubr.bf16.mxu1 %v727_v10 }
 0x1f0   : > { %1154 = vmatmul.mubr.bf16.vlgmr.msra.gmra.mxu1 %v728_v11  ;;  %v1274_v12 = vpop.eup %1273 }
 0x1f2   : > { %v1276_v13 = vpop.eup %1275 }
 0x1f4   : > { %v1278_v14 = vpop.eup %1277 }
 0x1f5   : > { %v1280_v15 = vpop.eup %1279  ;;  %v729_v16 = vpack.c.bf16 %v1278_v14, %v1274_v12 }
 0x1f6   : > { %v730_v17 = vpack.c.bf16 %v1276_v13, %v1280_v15 }
 0x1f7   : > { %1157 = vmatprep.mubr.bf16.mxu1 %v729_v16 }
 0x1f8   : > { %1158 = vmatmul.mubr.bf16.gmra.mxu1 %v730_v17 }
 0x2a0   : > { %v1147_v19 = vpop.f32.mrf.mxu0 }
 0x2a1   : > { %v845_v20 = vadd.f32 %v1147_v19, %v1006_v18 }
 0x2a2   : > { %v836_v21 = vpop.f32.mrf.mxu0 }
 0x2a3   : > { %901 = vst [vmem:[%s1444_s23 + $0x10] sm:$0xff] %v845_v20  ;;  %v837_v22 = vadd.f32 %v1006_v18, %v836_v21 }
 0x2a4   : > { %v1148_v23 = vpop.f32.mrf.mxu0 }
 0x2a5   : > { %899 = vst [vmem:[%s1444_s23] sm:$0xff] %v837_v22  ;;  %v848_v24 = vadd.f32 %v1148_v23, %v1006_v18 }
 0x2a6   : > { %v839_v25 = vpop.f32.mrf.mxu0 }
 0x2a7   : > { %902 = vst [vmem:[%s1444_s23 + $0x18] sm:$0xff] %v848_v24  ;;  %v840_v26 = vadd.f32 %v1006_v18, %v839_v25 }
 0x2a8   : > { %v1151_v27 = vpop.f32.mrf.mxu0 }
 0x2a9   : > { %900 = vst [vmem:[%s1444_s23 + $0x8] sm:$0xff] %v840_v26  ;;  %v861_v28 = vadd.f32 %v1151_v27, %v1006_v18 }
 0x2aa   : > { %v852_v29 = vpop.f32.mrf.mxu0 }
 0x2ab   : > { %905 = vst [vmem:[%s1444_s23 + $0x30] sm:$0xff] %v861_v28  ;;  %v853_v30 = vadd.f32 %v1006_v18, %v852_v29 }
 0x2ac   : > { %v1152_v31 = vpop.f32.mrf.mxu0 }
 0x2ad   : > { %903 = vst [vmem:[%s1444_s23 + $0x20] sm:$0xff] %v853_v30  ;;  %v864_v32 = vadd.f32 %v1152_v31, %v1006_v18 }
 0x2ae   : > { %v855_v33 = vpop.f32.mrf.mxu0 }
 0x2af   : > { %906 = vst [vmem:[%s1444_s23 + $0x38] sm:$0xff] %v864_v32  ;;  %v856_v34 = vadd.f32 %v1006_v18, %v855_v33 }
 0x2b0   : > { %v1155_v35 = vpop.f32.mrf.mxu1 }
 0x2b1   : > { %904 = vst [vmem:[%s1444_s23 + $0x28] sm:$0xff] %v856_v34  ;;  %v877_v36 = vadd.f32 %v1155_v35, %v1006_v18 }
 0x2b2   : > { %v868_v37 = vpop.f32.mrf.mxu1 }
 0x2b3   : > { %909 = vst [vmem:[%s1444_s23 + $0x50] sm:$0xff] %v877_v36  ;;  %v869_v38 = vadd.f32 %v1006_v18, %v868_v37 }
 0x2b4   : > { %v1156_v39 = vpop.f32.mrf.mxu1 }
 0x2b5   : > { %907 = vst [vmem:[%s1444_s23 + $0x40] sm:$0xff] %v869_v38  ;;  %v880_v40 = vadd.f32 %v1156_v39, %v1006_v18 }
 0x2b6   : > { %v871_v41 = vpop.f32.mrf.mxu1 }
 0x2b7   : > { %910 = vst [vmem:[%s1444_s23 + $0x58] sm:$0xff] %v880_v40  ;;  %v872_v42 = vadd.f32 %v1006_v18, %v871_v41 }
 0x2b8   : > { %v1159_v43 = vpop.f32.mrf.mxu1 }
 0x2b9   : > { %908 = vst [vmem:[%s1444_s23 + $0x48] sm:$0xff] %v872_v42  ;;  %v893_v44 = vadd.f32 %v1159_v43, %v1006_v18 }
 0x2ba   : > { %v884_v45 = vpop.f32.mrf.mxu1 }
 0x2bb   : > { %913 = vst [vmem:[%s1444_s23 + $0x70] sm:$0xff] %v893_v44  ;;  %v885_v46 = vadd.f32 %v1006_v18, %v884_v45 }
 0x2bc   : > { %v1160_v47 = vpop.f32.mrf.mxu1 }
 0x2bd   : > { %911 = vst [vmem:[%s1444_s23 + $0x60] sm:$0xff] %v885_v46  ;;  %v896_v48 = vadd.f32 %v1160_v47, %v1006_v18 }
 0x2be   : > { %v887_v49 = vpop.f32.mrf.mxu1 }
 0x2bf   : > { %914 = vst [vmem:[%s1444_s23 + $0x78] sm:$0xff] %v896_v48  ;;  %v888_v50 = vadd.f32 %v1006_v18, %v887_v49 }
 0x2c1   : > { %912 = vst [vmem:[%s1444_s23 + $0x68] sm:$0xff] %v888_v50 }
 0x2c2 PF: > { %s17_s24 = sadd.s32 1, %s1287_s24  }
 0x2c3   : > { %p14_p4 = scmp.ge.s32.totalorder %s17_s24, 4  }
 0x2c5   :  { %16 = sbr.rel (!%p14_p4) target bundleno = 1 (0x1), region = 78 }

</bundles_post_ra>
